<compile_context>
chip_gen: v6e
topology: v6e:2x2x1
jax: 0.10.0
libtpu: 0.0.40
codegen_flags: <defaults>
</compile_context>

<pallas_src>
import functools

import jax
import jax.numpy as jnp
from jax.experimental import pallas as pl
from jax.experimental.pallas import tpu as pltpu


_TM_TARGET = 1024         # row-tile target for the M axis (amortizes ~0.35us/step)
_LANE = 128               # lane width: pad K / N to multiples of this
_SUBLANE_BF16 = 16        # bf16 sublane packing granularity
_VMEM_BUDGET = 24 << 20   # stay under the 32 MiB default scoped VMEM everywhere


def _round_up(x, m):
    return ((x + m - 1) // m) * m


def _tm_vmem_cap(K_pad, N_pad, out_itemsize):
    """Largest row tile whose double-buffered footprint fits the VMEM budget."""
    # Weight/bias are grid-invariant but budget two copies conservatively.
    fixed = 2 * (K_pad * N_pad * 2 + N_pad * 4)
    per_row = 2 * (K_pad * 2 + N_pad * out_itemsize)
    cap = max((_VMEM_BUDGET - fixed) // per_row, _SUBLANE_BF16)
    return max((cap // _SUBLANE_BF16) * _SUBLANE_BF16, _SUBLANE_BF16)


def _choose_tm(M, target):
    """Pick the M-axis row tile (and the padded M).

    Prefer a divisor of M (multiple of 16, <= target): no M padding, no
    post-kernel row-slice copy, no wasted MXU cycles on padded rows. Among
    divisors prefer one giving an even grid (both v7x TensorCores busy) as
    long as it is at most 2x smaller than the largest divisor. Fall back to
    padding only when no usable divisor exists.
    """
    target = max(_SUBLANE_BF16, (target // _SUBLANE_BF16) * _SUBLANE_BF16)
    best = None
    best_even = None
    for tm in range(_SUBLANE_BF16, min(target, M) + 1, _SUBLANE_BF16):
        if M % tm == 0:
            if best is None or tm > best:
                best = tm
            if (M // tm) % 2 == 0 and (best_even is None or tm > best_even):
                best_even = tm
    if best is not None:
        if best_even is not None and best_even * 2 >= best:
            return best_even, M            # even grid, no padding
        return best, M                     # no padding
    tm = min(target, _round_up(M, _SUBLANE_BF16))
    return tm, _round_up(M, tm)            # padded fallback


# ---------------------------------------------------------------------------
# Pallas kernel: tiled matmul + bias  (patches @ W + b)
# ---------------------------------------------------------------------------
def _patch_proj_kernel(x_ref, w_ref, b_ref, o_ref):
    # x_ref: (tm, K_pad) bf16 patches tile, w_ref: (K_pad, N_pad) bf16 weight,
    # b_ref: (1, N_pad) f32 bias, o_ref: (tm, N_pad) output tile.
    acc = jnp.dot(x_ref[...], w_ref[...], preferred_element_type=jnp.float32)
    o_ref[...] = (acc + b_ref[...]).astype(o_ref.dtype)


def _patch_projection(patches, weight, bias, *, tm, out_dtype):
    """patches: (M_pad, K_pad) bf16, weight: (K_pad, N_pad) bf16,
    bias: (1, N_pad) f32 -> (M_pad, N_pad) out_dtype."""
    M_pad, K_pad = patches.shape
    _, N_pad = weight.shape
    assert M_pad % tm == 0
    out_itemsize = jnp.dtype(out_dtype).itemsize

    cost = pl.CostEstimate(
        flops=2 * M_pad * K_pad * N_pad,
        transcendentals=0,
        bytes_accessed=(M_pad * K_pad * 2 + K_pad * N_pad * 2 + N_pad * 4
                        + M_pad * N_pad * out_itemsize),
    )

    return pl.pallas_call(
        _patch_proj_kernel,
        out_shape=jax.ShapeDtypeStruct((M_pad, N_pad), out_dtype),
        grid_spec=pltpu.PrefetchScalarGridSpec(
            num_scalar_prefetch=0,
            grid=(M_pad // tm,),
            in_specs=[
                pl.BlockSpec((tm, K_pad), lambda i: (i, 0)),     # patch rows tile
                # Grid-invariant blocks: index_map is constant so Mosaic does
                # not re-DMA them across steps.
                # TODO(synk): pipeline_mode=pl.Buffered(1) to drop the second
                # VMEM copy once single-buffered specs are verified on all gens.
                pl.BlockSpec((K_pad, N_pad), lambda i: (0, 0)),  # full weight
                pl.BlockSpec((1, N_pad), lambda i: (0, 0)),      # bias
            ],
            out_specs=pl.BlockSpec((tm, N_pad), lambda i: (i, 0)),
        ),
        compiler_params=pltpu.CompilerParams(
            # M tiles are independent -> shard across TensorCores (v7x megacore).
            dimension_semantics=("parallel",),
        ),
        cost_estimate=cost,
    )(patches, weight, bias)


# ---------------------------------------------------------------------------
# Jitted forward: patch extraction glue + Pallas projection
# ---------------------------------------------------------------------------
@functools.partial(jax.jit,
                   static_argnames=("ph", "pw", "embed_dim", "out_dtype", "tm_target"))
def _patch_embed_forward(pixel_values, w_pad, b_pad, *, ph, pw, embed_dim,
                         out_dtype=jnp.bfloat16, tm_target=_TM_TARGET):
    B, C, H, W = pixel_values.shape
    nH, nW = H // ph, W // pw
    num_patches = nH * nW
    M = B * num_patches
    K = C * ph * pw
    K_pad, N_pad = w_pad.shape

    # Cast activations to bf16 *before* the layout pass: halves the HBM traffic
    # of the im2col copy and of the kernel's input DMA.
    x = pixel_values.astype(jnp.bfloat16)
    # Match Conv2d "VALID" truncation when H/W are not multiples of the patch
    # (only reachable via interpolate_pos_encoding=True).
    if H % ph or W % pw:
        x = x[:, :, : nH * ph, : nW * pw]

    # Patch extraction (im2col):
    # (B, C, H, W) -> (B, C, nH, Ph, nW, Pw) -> (B, nH, nW, C, Ph, Pw)
    # -> (B*num_patches, C*Ph*Pw); contraction order matches Conv2d OIHW weight.
    x = x.reshape(B, C, nH, ph, nW, pw)
    x = jnp.transpose(x, (0, 2, 4, 1, 3, 5))
    patches = x.reshape(M, K)

    out_itemsize = jnp.dtype(out_dtype).itemsize
    tm, M_pad = _choose_tm(
        M, min(tm_target, _tm_vmem_cap(K_pad, N_pad, out_itemsize)))

    # Pad only when needed (K already lane-aligned for real ViT shapes; M_pad
    # equals M whenever a divisor tile exists, so this is usually a no-op).
    if M_pad != M or K_pad != K:
        patches = jnp.pad(patches, ((0, M_pad - M), (0, K_pad - K)))

    out = _patch_projection(patches, w_pad, b_pad, tm=tm, out_dtype=out_dtype)

    if M_pad != M:
        out = out[:M]
    if N_pad != embed_dim:
        out = out[:, :embed_dim]
    return out.reshape(B, num_patches, embed_dim)


# ---------------------------------------------------------------------------
# Module-equivalent wrapper
# ---------------------------------------------------------------------------
class PatchEmbeddings:
    """JAX/Pallas equivalent of the PyTorch PatchEmbeddings module.

    Note: the MXU runs in bf16 with f32 accumulation and the output is stored
    in `out_dtype` (bf16 by default, a deliberate perf/precision trade-off vs
    the f32 PyTorch Conv2d; pass out_dtype=jnp.float32 for f32-exact storage).
    """

    def __init__(self, image_size=224, patch_size=16, num_channels=3,
                 embed_dim=768, *, key=None, param_dtype=jnp.float32,
                 out_dtype=jnp.bfloat16):
        image_size = (image_size, image_size) if isinstance(image_size, int) else tuple(image_size)
        patch_size = (patch_size, patch_size) if isinstance(patch_size, int) else tuple(patch_size)
        self.image_size = image_size
        self.patch_size = patch_size
        self.num_channels = num_channels
        self.embed_dim = embed_dim
        self.out_dtype = out_dtype
        self.num_patches = (image_size[1] // patch_size[1]) * (image_size[0] // patch_size[0])

        if key is None:
            key = jax.random.PRNGKey(0)
        k_w, k_b = jax.random.split(key)
        # Conv2d parameter layout: weight (E, C, Ph, Pw), bias (E,)
        Ph, Pw = patch_size
        K = num_channels * Ph * Pw
        bound = 1.0 / float(K) ** 0.5
        self.conv_weight = jax.random.uniform(
            k_w, (embed_dim, num_channels, Ph, Pw),
            minval=-bound, maxval=bound, dtype=param_dtype)
        self.conv_bias = jax.random.uniform(
            k_b, (embed_dim,), minval=-bound, maxval=bound, dtype=param_dtype)

        # Pre-bake the matmul-layout weight/bias ONCE (no per-call transpose):
        #   (E, C, Ph, Pw) -> (E, K) -> (K, E), zero-padded to lane-aligned
        #   (K_pad, N_pad), stored in bf16 for the MXU. Bias stays f32 and is
        #   added to the f32 accumulator inside the kernel.
        K_pad = _round_up(K, _LANE)
        N_pad = _round_up(embed_dim, _LANE)
        w = self.conv_weight.reshape(embed_dim, K).T
        w = jnp.pad(w, ((0, K_pad - K), (0, N_pad - embed_dim)))
        self._w_matmul = w.astype(jnp.bfloat16)
        b = jnp.pad(self.conv_bias.astype(jnp.float32), (0, N_pad - embed_dim))
        self._b_matmul = b.reshape(1, N_pad)

    def __call__(self, pixel_values, interpolate_pos_encoding=False):
        # pixel_values layout: NCHW, matching the PyTorch Conv2d input.
        B, C, H, W = pixel_values.shape
        if not interpolate_pos_encoding:
            if H != self.image_size[0] or W != self.image_size[1]:
                raise ValueError(
                    f"Input image size ({H}*{W}) doesn't match model "
                    f"({self.image_size[0]}*{self.image_size[1]}).")
        Ph, Pw = self.patch_size
        return _patch_embed_forward(
            pixel_values, self._w_matmul, self._b_matmul,
            ph=Ph, pw=Pw, embed_dim=self.embed_dim, out_dtype=self.out_dtype)


# ---------------------------------------------------------------------------
# Demo / correctness check
# ---------------------------------------------------------------------------
if __name__ == "__main__":
    key = jax.random.PRNGKey(0)
    k_img, k_params = jax.random.split(key)

    # Small shapes consistent with the module's forward: batch=2, C=4,
    # image 16x16, patch 4 -> 16 patches, embed_dim=32.
    B, C, H, W = 2, 4, 16, 16
    patch, embed_dim = 4, 32

    pixel_values = jax.random.normal(k_img, (B, C, H, W), dtype=jnp.float32)

    module = PatchEmbeddings(image_size=H, patch_size=patch,
                             num_channels=C, embed_dim=embed_dim, key=k_params)

    out = module(pixel_values)
    out = jax.block_until_ready(out)

    # Reference: the actual strided convolution (NCHW, OIHW), flatten(2).transpose(1,2),
    # computed in f32. Kernel runs the MXU in bf16 and stores bf16, so use a
    # bf16-appropriate tolerance.
    ref_conv = jax.lax.conv_general_dilated(
        pixel_values, module.conv_weight,
        window_strides=(patch, patch), padding="VALID",
        dimension_numbers=("NCHW", "OIHW", "NCHW"))
    ref_conv = ref_conv + module.conv_bias.reshape(1, embed_dim, 1, 1)
    ref = jnp.transpose(ref_conv.reshape(B, embed_dim, -1), (0, 2, 1))

    assert out.shape == (B, module.num_patches, embed_dim), out.shape
    assert jnp.allclose(out.astype(jnp.float32), ref, atol=5e-2, rtol=5e-2), \
        "mismatch vs conv reference"

    print("KERNEL_OK")
</pallas_src>

<mosaic_0001>
module attributes {stable_mosaic.version = 11 : i64} {
  func.func @_patch_proj_kernel(%arg0: i32, %arg1: memref<16x128xbf16, #tpu.memory_space<vmem>>, %arg2: memref<128x128xbf16, #tpu.memory_space<vmem>>, %arg3: memref<1x128xf32, #tpu.memory_space<vmem>>, %arg4: memref<16x128xbf16, #tpu.memory_space<vmem>>) attributes {dimension_semantics = [#tpu.dimension_semantics<parallel>], iteration_bounds = array<i64: 2>, scalar_prefetch = 0 : i64, scratch_operands = 0 : i64, tpu.core_type = #tpu.core_type<tc>, window_params = [{transform_indices = @transform_0, window_bounds = array<i64: 16, 128>}, {pipeline_mode = #tpu.pipeline_mode<synchronous>, transform_indices = @transform_1, window_bounds = array<i64: 128, 128>}, {pipeline_mode = #tpu.pipeline_mode<synchronous>, transform_indices = @transform_2, window_bounds = array<i64: 1, 128>}, {transform_indices = @transform_3, window_bounds = array<i64: 16, 128>}]} {
    %c0 = arith.constant 0 : index
    %c0_0 = arith.constant 0 : index
    %0 = vector.load %arg1[%c0, %c0_0] : memref<16x128xbf16, #tpu.memory_space<vmem>>, vector<16x128xbf16>
    %c0_1 = arith.constant 0 : index
    %c0_2 = arith.constant 0 : index
    %1 = vector.load %arg2[%c0_1, %c0_2] : memref<128x128xbf16, #tpu.memory_space<vmem>>, vector<128x128xbf16>
    %cst = arith.constant dense<0.000000e+00> : vector<16x128xf32>
    %2 = tpu.matmul %0, %1, %cst {dimension_numbers = #tpu.dot_dimension_numbers<[1], [0], [0], [1], [0, 0, 1, 1], [], []>} : vector<16x128xbf16>, vector<128x128xbf16>, vector<16x128xf32> -> vector<16x128xf32>
    %c0_3 = arith.constant 0 : index
    %c0_4 = arith.constant 0 : index
    %3 = vector.load %arg3[%c0_3, %c0_4] : memref<1x128xf32, #tpu.memory_space<vmem>>, vector<1x128xf32>
    %4 = vector.broadcast %3 : vector<1x128xf32> to vector<16x128xf32>
    %5 = arith.addf %2, %4 : vector<16x128xf32>
    %6 = arith.truncf %5 : vector<16x128xf32> to vector<16x128xbf16>
    %c0_5 = arith.constant 0 : index
    %c0_6 = arith.constant 0 : index
    %7 = vector.load %arg4[%c0_5, %c0_6] : memref<16x128xbf16, #tpu.memory_space<vmem>>, vector<16x128xbf16>
    tpu.vector_store %arg4[%c0_5, %c0_6], %6 {strides = array<i32>} : memref<16x128xbf16, #tpu.memory_space<vmem>>, vector<16x128xbf16>,
    return
  }
  func.func @transform_0(%arg0: i32) -> (i32, i32) {
    %c0_i32 = arith.constant 0 : i32
    %c0_i32_0 = arith.constant 0 : i32
    return %arg0, %c0_i32 : i32, i32
  }
  func.func @transform_1(%arg0: i32) -> (i32, i32) {
    %c0_i32 = arith.constant 0 : i32
    %c0_i32_0 = arith.constant 0 : i32
    %c0_i32_1 = arith.constant 0 : i32
    return %c0_i32, %c0_i32_0 : i32, i32
  }
  func.func @transform_2(%arg0: i32) -> (i32, i32) {
    %c0_i32 = arith.constant 0 : i32
    %c0_i32_0 = arith.constant 0 : i32
    %c0_i32_1 = arith.constant 0 : i32
    return %c0_i32, %c0_i32_0 : i32, i32
  }
  func.func @transform_3(%arg0: i32) -> (i32, i32) {
    %c0_i32 = arith.constant 0 : i32
    %c0_i32_0 = arith.constant 0 : i32
    return %arg0, %c0_i32 : i32, i32
  }
}

</mosaic_0001>

<bundles_post_ra>
// kernel: _patch_embed_forward.1
= control target key start
LH: loop header
LB: loop body
LE: loop exit
PB: predicated region body
PF: predicated region fallthrough
CT: control target
= control target key end

     0   :  { %8 = vsyncpa [#allocation3], 0  ;;  %s707_s0 = inlined_call_operand.vmem [shape: bf16[32,128], index: 0, kind: input, shape index: {}]   ;;  %s708_s1 = inlined_call_operand.vmem [shape: bf16[128,128], index: 1, kind: input, shape index: {}]   ;;  %s709_s2 = inlined_call_operand.vmem [shape: f32[1,128], index: 2, kind: input, shape index: {}]   ;;  %s710_s3 = inlined_call_operand.hbm [shape: bf16[32,128], index: 3, kind: output, shape index: {}]  }
   0x1   :  { %10 = vsyncpa [#allocation3 + $0x1], 0  ;;  %s579_s12 = smov 0   ;;  %s581_s13 = smov 0  }
   0x2   :  { %s583_s14 = smov 0   ;;  %s585_s15 = smov 0  }
   0x3 LB: > { %s600_s16 = sadd.s32 4294967295, %s552_s15   ;;  %s379_s17 = sadd.s32 4294967294, %s552_s15   ;;  %s552_s15 = sphi %s585_s15, %s716_s15   ;;  %s548_s14 = sphi %s583_s14, %s715_s14   ;;  %s544_s13 = sphi %s581_s13, %s714_s13   ;;  %s540_s12 = sphi %s579_s12, %s713_s12  }
   0x4   : > { %s604_s18 = sadd.s32 1, %s552_s15   ;;  %s91_s19 = sadd.s32 1, %s548_s14 }
   0x5   : > { %s88_s20 = ssub.s32 %s552_s15, %s604_s18  ;;  %p101_p0 = scmp.ne.s32.totalorder %s548_s14, %s544_s13 }
   0x6   : > { %p89_p1 = scmp.eq.s32.totalorder %s88_s20, 0  ;;  %p102_p2 = scmp.eq.s32.totalorder %s600_s16, 1 }
   0x7   : > { %p107_p3 = scmp.ne.s32.totalorder %s544_s13, %s540_s12  ;;  %p108_p4 = scmp.eq.s32.totalorder %s379_s17, 1 }
   0x8   : > { %s615_s21 = scalar_select %p89_p1, %s548_s14, %s91_s19  }
   0x9   : > { %p617_p5 = por %p102_p2, %p101_p0  ;;  %p621_p6 = por %p108_p4, %p107_p3 }
   0xa   : > { %p382_p7 = scmp.ge.s32.totalorder %s552_s15, 1  ;;  %p141_p8 = scmp.lt.s32.totalorder %s552_s15, 3 }
   0xc   : > { %p142_p9 = pnand %p382_p7, %p141_p8 }
   0xd   : > { %s384_s28 = sshll.u32 (!%p142_p9), %s600_s16, 1  ;;  %s162_s27 = sand.u32 (!%p142_p9), 1, %s544_s13  }
   0xe   : > { %145 = sbr.rel (%p142_p9) target bundleno = 267 (0x10b), region = 32  ;;  %p166_p10 = scmp.lt.s32.totalorder (!%p142_p9), %s384_s28, 3 }
   0xf   : > { %s405_s6 = sshll.u32 (!%p142_p9), %s600_s16, 7  ;;  %s667_s10 = scalar_lea.sflag (!%p142_p9), [#allocation3], %s162_s27 }
  0x10   : > { %s665_s9 = scalar_lea.hbm (!%p142_p9), %s710_s3, %s405_s6  ;;  %s556_s16 = smov (!%p142_p9), [#allocation2]  }
  0x11   : > { %s496_s17 = sshll.u32 (!%p142_p9), %s556_s16, 4  ;;  %s497_s17 = int_to_ptr.vmem [resolvable:$false] %s496_s17 }
  0x12   : > { %s498_s19 = scalar_lea.vmem (!%p142_p9), %s497_s17, 256 }
  0x13   : > { %v483_v0 = vld [vmem:[%s708_s1 + $0x38] sm:$0xff]   ;;  %v554_v1 = vmov 0.0   ;;  %v484_v2 = vld [vmem:[%s708_s1 + $0x30] sm:$0xff]   ;;  %vm555_vm0 = vmmov 0   ;;  %s718_s28 = smov (!%p166_p10, %s384_s28), 3  ;;  %v485_v3 = vld [vmem:[%s708_s1 + $0x28] sm:$0xff]  }
  0x14   : > { %420 = vmatprep.subr.bf16.mxu0 %v554_v1  ;;  %436 = vmatprep.mubr.msk.bf16.mxu0 %vm555_vm0, %v554_v1  ;;  %s385_s4 = sshll.u32 %s718_s28, 2  ;;  %v486_v4 = vld [vmem:[%s708_s1 + $0x20] sm:$0xff]   ;;  %v487_v5 = vld [vmem:[%s708_s1 + $0x18] sm:$0xff]   ;;  %v488_v6 = vld [vmem:[%s708_s1 + $0x10] sm:$0xff]   ;;  %s383_s28 = sshll.u32 %s162_s27, 3 }
  0x15   : > { %421 = vmatpush3.bf16.msra.mxu0 %v483_v0  ;;  %s169_s7 = scalar_lea.vmem %s707_s0, %s385_s4  ;;  %v489_v7 = vld [vmem:[%s708_s1 + $0x8] sm:$0xff]   ;;  %v490_v8 = vld [vmem:[%s708_s1] sm:$0xff]   ;;  %s164_s4 = scalar_lea.vmem [#allocation2], %s383_s28 }
  0x16   : > { %422 = vmatprep.subr.bf16.mxu0 %v554_v1  ;;  %v491_v9 = vld [vmem:[%s169_s7] sm:$0xff]   ;;  %s317_s5 = sshll.u32 %s164_s4, 4  ;;  %s660_s5 = int_to_ptr.vmem [resolvable:$true] %s317_s5 }
  0x17   : > { %v386_v11 = vld [vmem:[%s709_s2] ss:$0 sm:$0xff]  ;;  %s492_s11 = scalar_lea.vmem %s660_s5, 128  ;;  %p499_p0 = scmp.lt.s32.totalorder %s660_s5, %s497_s17 }
  0x18   : > { %p493_p11 = scmp.ne.s32.totalorder %s660_s5, %s492_s11  ;;  %p500_p1 = scmp.lt.s32.totalorder %s498_s19, %s492_s11 }
  0x19   : > { %423 = vmatpush3.bf16.msra.mxu0 %v484_v2 }
  0x1a   : > { %424 = vmatprep.subr.bf16.mxu0 %v554_v1  ;;  %p494_p12 = pnand %p493_p11, %p617_p5  ;;  %p501_p2 = por %p500_p1, %p499_p0 }
  0x1c   : > { %p495_p13 = pneg %p494_p12 }
  0x1d   : > { %425 = vmatpush3.bf16.msra.mxu0 %v485_v3 }
  0x1e   : > { %426 = vmatprep.subr.bf16.mxu0 %v554_v1  ;;  %p502_p3 = pnand %p501_p2, %p495_p13 }
  0x21   : > { %427 = vmatpush3.bf16.msra.mxu0 %v486_v4 }
  0x22   : > { %428 = vmatprep.subr.bf16.mxu0 %v554_v1 }
  0x25   : > { %429 = vmatpush3.bf16.msra.mxu0 %v487_v5 }
  0x26   : > { %430 = vmatprep.subr.bf16.mxu0 %v554_v1 }
  0x29   : > { %431 = vmatpush3.bf16.msra.mxu0 %v488_v6 }
  0x2a   : > { %432 = vmatprep.subr.bf16.mxu0 %v554_v1 }
  0x2d   : > { %433 = vmatpush3.bf16.msra.mxu0 %v489_v7 }
  0x2e   : > { %434 = vmatprep.subr.bf16.mxu0 %v554_v1 }
  0x31   : > { %435 = vmatpush3.bf16.msra.mxu0 %v490_v8 }
  0x34   : > { %437 = vmatmul.mubr.bf16.vlgmr.msra.gmra.mxu0 %v491_v9 }
  0xf4   : > { %v286_v10 = vpop.f32.mrf.mxu0 }
  0xf5   : > { %v287_v14 = vadd.f32 %v386_v11, %v286_v10 }
  0xf6   : > { %v438_v12 = vpop.f32.mrf.mxu0 }
  0xf8   : > { %v289_v13 = vpop.f32.mrf.mxu0 }
  0xf9   : > { %v290_v15 = vadd.f32 %v386_v11, %v289_v13 }
  0xfa   : > { %v439_v16 = vpop.f32.mrf.mxu0 }
  0xfb   : > { %v409_v17 = vpack.c.bf16 %v290_v15, %v287_v14 }
  0xfd   : > { %410 = vst [vmem:[%s164_s4] sm:$0xff] %v409_v17  }
  0xfe   : > { %505 = shalt.err (!%p502_p3)
}
  0xff   : > { %s506_s20 = scalar_lea.hbm %s665_s9, 128  ;;  %s510_s26 = scalar_lea.hbm %s710_s3, 256 }
 0x100   : > { %p507_p4 = scmp.ne.s32.totalorder %s665_s9, %s506_s20  ;;  %p511_p9 = scmp.lt.s32.totalorder %s665_s9, %s710_s3 }
 0x101   : > { %p512_p10 = scmp.lt.s32.totalorder %s510_s26, %s506_s20 }
 0x102   : > { %p508_p7 = pnand %p507_p4, %p617_p5 }
 0x103   : > { %p513_p11 = por %p512_p10, %p511_p9 }
 0x104   : > { %p509_p8 = pneg %p508_p7 }
 0x106   : > { %p514_p12 = pnand %p513_p11, %p509_p8 }
 0x108   : > { %517 = shalt.err (!%p514_p12)
}
 0x109   : > { %s557_s29 = smov 64   ;;  %s558_s30 = smov 4  }
 0x10a   : > { %440 = dma.vmem_to_hbm [thread:$0]  (%p617_p5), %s660_s5, 128, %s665_s9, %s667_s10, %s557_s29, %s557_s29, %s558_s30  }
 0x10b PF: > { %p446_p13 = scmp.ge.s32.totalorder %s552_s15, 2  ;;  %s332_s4 = sand.u32 1, %s540_s12  }
 0x10c   : > { %s333_s6 = scalar_lea.sflag [#allocation3], %s332_s4 }
 0x10d   : > { %p443_p0 = pnand %p446_p13, %p621_p6 }
 0x10f   : > { %p444_p1 = pneg %p443_p0 }
 0x111   : > { %535 = dma.done.wait (%p444_p1), %s333_s6, 128  }
 0x112   : > { %537 = vsyncadd (%p444_p1), %s333_s6, 4294967168  ;;  %p13_p2 = scmp.ge.s32.totalorder %s604_s18, 4   ;;  %s713_s12 = smov %s544_s13 }
 0x113   : > { %s714_s13 = smov %s548_s14  ;;  %s715_s14 = smov %s615_s21 }
 0x114   : > { %s716_s15 = smov %s604_s18  ;;  %15 = sbr.rel (!%p13_p2) target bundleno = 3 (0x3), region = 67 }
 0x119   :  { %338 = vsyncpa [#allocation3], 1 }
 0x11a   :  { %340 = vsyncpa [#allocation3 + $0x1], 1 }

</bundles_post_ra>
